<compile_context>
chip_gen: v7x
topology: tpu7x:2x2x1
jax: 0.10.0
libtpu: 0.0.40
codegen_flags: <defaults>
</compile_context>

<pallas_src>
import jax
import jax.numpy as jnp
from jax.experimental import pallas as pl
from jax.experimental.pallas import tpu as pltpu


# ---------------------------------------------------------------------------
# Kernel: whole forward (4 matmuls + 4 ReLUs) for one batch tile.
# ---------------------------------------------------------------------------
def ae_kernel(x_ref,
              w1_ref, b1_ref, w2_ref, b2_ref,       # encoder L1, L2
              wc_ref, bc_ref,                       # [W3(pad128) | W3@W4] : [128,256]
              w5_ref, b5_ref, w6_ref, b6_ref,       # decoder L2, L3
              enc_ref, dec_ref):
    f32 = jnp.float32
    bf16 = jnp.bfloat16

    x = x_ref[...].astype(bf16)                                        # f32 -> bf16 in-register

    # encoder: Linear(128,256) -> ReLU -> Linear(256,128) -> ReLU
    h = jnp.dot(x, w1_ref[...], preferred_element_type=f32) + b1_ref[...]
    h = jnp.maximum(h, 0.0)
    h = jnp.dot(h.astype(bf16), w2_ref[...], preferred_element_type=f32) + b2_ref[...]
    h = jnp.maximum(h, 0.0)
    h_bf = h.astype(bf16)                                              # [tb, 128]

    # Single N=256 matmul: cols [0:16] = enc head (W3), cols [128:256] = the
    # fused W3@W4 decoder entry (no nonlinearity between enc and dec layer 1,
    # so the 16-deep contraction is folded into one 128x128 matrix).
    comb = jnp.dot(h_bf, wc_ref[...], preferred_element_type=f32) + bc_ref[...]
    enc_ref[...] = comb[:, :16].astype(enc_ref.dtype)                  # (tb, 16) store

    d = jnp.maximum(comb[:, 128:], 0.0)                                # lane-aligned split
    d = jnp.dot(d.astype(bf16), w5_ref[...], preferred_element_type=f32) + b5_ref[...]
    d = jnp.maximum(d, 0.0)
    dec = jnp.dot(d.astype(bf16), w6_ref[...], preferred_element_type=f32) + b6_ref[...]
    dec_ref[...] = dec.astype(dec_ref.dtype)


# ---------------------------------------------------------------------------
# Weight preparation: transpose to [in,out], bf16 cast, fuse W3@W4, build the
# combined [128,256] enc-head/decoder-entry weight.
# ---------------------------------------------------------------------------
def prepare_params(params):
    f32, bf16 = jnp.float32, jnp.bfloat16

    w1 = params["enc_w1"].T.astype(bf16)               # [128, 256]
    b1 = params["enc_b1"].astype(f32)[None, :]
    w2 = params["enc_w2"].T.astype(bf16)                # [256, 128]
    b2 = params["enc_b2"].astype(f32)[None, :]

    w3 = params["enc_w3"].T.astype(f32)                 # [128, 16]
    b3 = params["enc_b3"].astype(f32)                   # [16]
    w4 = params["dec_w1"].T.astype(f32)                 # [16, 128]
    b4 = params["dec_b1"].astype(f32)                   # [128]

    w34 = w3 @ w4                                       # [128, 128]  (fused in f32)
    b34 = b3 @ w4 + b4                                   # [128]

    # Combined weight: cols 0:16 = W3, cols 16:128 = 0, cols 128:256 = W3@W4.
    w3_pad = jnp.pad(w3, ((0, 0), (0, 112)))
    b3_pad = jnp.pad(b3, (0, 112))
    wc = jnp.concatenate([w3_pad, w34], axis=1).astype(bf16)   # [128, 256]
    bc = jnp.concatenate([b3_pad, b34])[None, :].astype(f32)   # [1, 256]

    w5 = params["dec_w2"].T.astype(bf16)                # [128, 256]
    b5 = params["dec_b2"].astype(f32)[None, :]
    w6 = params["dec_w3"].T.astype(bf16)                # [256, 128]
    b6 = params["dec_b3"].astype(f32)[None, :]

    return dict(w1=w1, b1=b1, w2=w2, b2=b2, wc=wc, bc=bc,
                w5=w5, b5=b5, w6=w6, b6=b6)


_PARAM_ORDER = ("w1", "b1", "w2", "b2", "wc", "bc", "w5", "b5", "w6", "b6")


def _pick_tile_b(B):
    # Single full-extent tile up to 2048 rows (per-grid-step overhead dominates
    # a kernel this small; full extent is always a legal block shape).
    if B <= 2048:
        return B
    # Large batches: 2048-row tiles (~10 MB VMEM incl. double buffers, fits
    # v5e/v6e/v7x) and >= 2 "parallel" grid steps so both v7x TCs get work.
    return 2048


# ---------------------------------------------------------------------------
# Wrapper
# ---------------------------------------------------------------------------
def ae_forward(x, params, *, tile_b=None):
    """x: [B, 128] float32. params: PyTorch-convention weights. Returns (enc, dec)."""
    B, D_in = x.shape
    assert D_in == 128
    if tile_b is None:
        tile_b = _pick_tile_b(B)

    prep = prepare_params(params)
    ordered = [prep[k] for k in _PARAM_ORDER]

    grid = (pl.cdiv(B, tile_b),)        # partial last block handled by Pallas

    def whole(arr):
        # weight / bias: full array resident in VMEM every grid step
        return pl.BlockSpec(arr.shape, lambda i: (0, 0))

    in_specs = [pl.BlockSpec((tile_b, 128), lambda i: (i, 0))] \
        + [whole(a) for a in ordered]
    out_specs = [
        pl.BlockSpec((tile_b, 16), lambda i: (i, 0)),    # enc (full 16-lane extent)
        pl.BlockSpec((tile_b, 128), lambda i: (i, 0)),   # dec
    ]
    out_shape = (
        jax.ShapeDtypeStruct((B, 16), jnp.float32),
        jax.ShapeDtypeStruct((B, 128), jnp.float32),
    )

    weight_bytes = sum(int(a.size) * a.dtype.itemsize for a in ordered)
    cost = pl.CostEstimate(
        flops=2 * B * (128 * 256 + 256 * 128 + 128 * 256 + 128 * 256 + 256 * 128),
        transcendentals=0,
        bytes_accessed=B * 128 * 4 + B * 16 * 4 + B * 128 * 4 + weight_bytes,
    )

    enc, dec = pl.pallas_call(
        ae_kernel,
        out_shape=out_shape,
        grid_spec=pltpu.PrefetchScalarGridSpec(
            num_scalar_prefetch=0,
            grid=grid,
            in_specs=in_specs,
            out_specs=out_specs,
        ),
        compiler_params=pltpu.CompilerParams(
            dimension_semantics=("parallel",),
            vmem_limit_bytes=64 * 1024 * 1024,
        ),
        cost_estimate=cost,
    )(x, *ordered)

    return enc, dec


# ---------------------------------------------------------------------------
# References
# ---------------------------------------------------------------------------
def ae_reference_f32(x, params):
    """Pure-f32 reference matching the PyTorch forward exactly."""
    h = jnp.maximum(x @ params["enc_w1"].T + params["enc_b1"], 0.0)
    h = jnp.maximum(h @ params["enc_w2"].T + params["enc_b2"], 0.0)
    enc = h @ params["enc_w3"].T + params["enc_b3"]
    h = jnp.maximum(enc @ params["dec_w1"].T + params["dec_b1"], 0.0)
    h = jnp.maximum(h @ params["dec_w2"].T + params["dec_b2"], 0.0)
    dec = h @ params["dec_w3"].T + params["dec_b3"]
    return enc, dec


def ae_reference_matched(x, prep):
    """Reference mirroring the kernel's exact precision schedule (bf16 operands,
    f32 accumulation, fused [W3|W3@W4] matmul) for a tight correctness check."""
    f32, bf16 = jnp.float32, jnp.bfloat16
    xb = x.astype(bf16)
    h = jnp.maximum(jnp.dot(xb, prep["w1"], preferred_element_type=f32) + prep["b1"], 0.0)
    h = jnp.maximum(jnp.dot(h.astype(bf16), prep["w2"], preferred_element_type=f32) + prep["b2"], 0.0)
    hb = h.astype(bf16)
    comb = jnp.dot(hb, prep["wc"], preferred_element_type=f32) + prep["bc"]
    enc = comb[:, :16]
    d = jnp.maximum(comb[:, 128:], 0.0)
    d = jnp.maximum(jnp.dot(d.astype(bf16), prep["w5"], preferred_element_type=f32) + prep["b5"], 0.0)
    dec = jnp.dot(d.astype(bf16), prep["w6"], preferred_element_type=f32) + prep["b6"]
    return enc, dec


# ---------------------------------------------------------------------------
# Deterministic parameter init (PyTorch-style uniform, synthetic)
# ---------------------------------------------------------------------------
def init_params(key):
    shapes = {
        "enc_w1": (256, 128), "enc_b1": (256,),
        "enc_w2": (128, 256), "enc_b2": (128,),
        "enc_w3": (16, 128),  "enc_b3": (16,),
        "dec_w1": (128, 16),  "dec_b1": (128,),
        "dec_w2": (256, 128), "dec_b2": (256,),
        "dec_w3": (128, 256), "dec_b3": (128,),
    }
    fan_in = {
        "enc_w1": 128, "enc_b1": 128,
        "enc_w2": 256, "enc_b2": 256,
        "enc_w3": 128, "enc_b3": 128,
        "dec_w1": 16,  "dec_b1": 16,
        "dec_w2": 128, "dec_b2": 128,
        "dec_w3": 256, "dec_b3": 256,
    }
    params = {}
    keys = jax.random.split(key, len(shapes))
    for k, (name, shp) in zip(keys, sorted(shapes.items())):
        bound = 1.0 / (fan_in[name] ** 0.5)
        params[name] = jax.random.uniform(
            k, shp, dtype=jnp.float32, minval=-bound, maxval=bound)
    return params


if __name__ == "__main__":
    key = jax.random.PRNGKey(0)
    k_x, k_p = jax.random.split(key)

    B = 64                                     # small demo batch, single tile
    x = jax.random.normal(k_x, (B, 128), dtype=jnp.float32)
    params = init_params(k_p)

    enc, dec = ae_forward(x, params)
    enc, dec = jax.block_until_ready((enc, dec))
    assert enc.shape == (B, 16) and dec.shape == (B, 128)

    # Tight check vs. a reference with the identical bf16/f32 precision schedule.
    prep = prepare_params(params)
    enc_m, dec_m = ae_reference_matched(x, prep)
    assert jnp.allclose(enc, enc_m, atol=2e-3, rtol=2e-3)
    assert jnp.allclose(dec, dec_m, atol=2e-3, rtol=2e-3)

    # Loose check vs. exact f32 PyTorch semantics (bf16 rounding tolerance).
    # NOTE: dec is computed through the pre-fused W3@W4 path, so dec ==
    # decoder(enc) only up to bf16 rounding (mathematically equivalent).
    enc_f, dec_f = ae_reference_f32(x, params)
    assert jnp.allclose(enc, enc_f, atol=1e-1, rtol=1e-1)
    assert jnp.allclose(dec, dec_f, atol=1e-1, rtol=1e-1)

    print("KERNEL_OK")
</pallas_src>

<mosaic_0001>
module attributes {stable_mosaic.version = 11 : i64} {
  func.func @ae_kernel(%arg0: i32, %arg1: memref<64x128xf32, #tpu.memory_space<vmem>>, %arg2: memref<128x256xbf16, #tpu.memory_space<vmem>>, %arg3: memref<1x256xf32, #tpu.memory_space<vmem>>, %arg4: memref<256x128xbf16, #tpu.memory_space<vmem>>, %arg5: memref<1x128xf32, #tpu.memory_space<vmem>>, %arg6: memref<128x256xbf16, #tpu.memory_space<vmem>>, %arg7: memref<1x256xf32, #tpu.memory_space<vmem>>, %arg8: memref<128x256xbf16, #tpu.memory_space<vmem>>, %arg9: memref<1x256xf32, #tpu.memory_space<vmem>>, %arg10: memref<256x128xbf16, #tpu.memory_space<vmem>>, %arg11: memref<1x128xf32, #tpu.memory_space<vmem>>, %arg12: memref<64x16xf32, #tpu.memory_space<vmem>>, %arg13: memref<64x128xf32, #tpu.memory_space<vmem>>) attributes {dimension_semantics = [#tpu.dimension_semantics<parallel>], iteration_bounds = array<i64: 1>, scalar_prefetch = 0 : i64, scratch_operands = 0 : i64, tpu.core_type = #tpu.core_type<tc>, window_params = [{transform_indices = @transform_0, window_bounds = array<i64: 64, 128>}, {pipeline_mode = #tpu.pipeline_mode<synchronous>, transform_indices = @transform_1, window_bounds = array<i64: 128, 256>}, {pipeline_mode = #tpu.pipeline_mode<synchronous>, transform_indices = @transform_2, window_bounds = array<i64: 1, 256>}, {pipeline_mode = #tpu.pipeline_mode<synchronous>, transform_indices = @transform_3, window_bounds = array<i64: 256, 128>}, {pipeline_mode = #tpu.pipeline_mode<synchronous>, transform_indices = @transform_4, window_bounds = array<i64: 1, 128>}, {pipeline_mode = #tpu.pipeline_mode<synchronous>, transform_indices = @transform_5, window_bounds = array<i64: 128, 256>}, {pipeline_mode = #tpu.pipeline_mode<synchronous>, transform_indices = @transform_6, window_bounds = array<i64: 1, 256>}, {pipeline_mode = #tpu.pipeline_mode<synchronous>, transform_indices = @transform_7, window_bounds = array<i64: 128, 256>}, {pipeline_mode = #tpu.pipeline_mode<synchronous>, transform_indices = @transform_8, window_bounds = array<i64: 1, 256>}, {pipeline_mode = #tpu.pipeline_mode<synchronous>, transform_indices = @transform_9, window_bounds = array<i64: 256, 128>}, {pipeline_mode = #tpu.pipeline_mode<synchronous>, transform_indices = @transform_10, window_bounds = array<i64: 1, 128>}, {transform_indices = @transform_11, window_bounds = array<i64: 64, 16>}, {transform_indices = @transform_12, window_bounds = array<i64: 64, 128>}]} {
    %c0 = arith.constant 0 : index
    %c0_0 = arith.constant 0 : index
    %0 = vector.load %arg1[%c0, %c0_0] : memref<64x128xf32, #tpu.memory_space<vmem>>, vector<64x128xf32>
    %1 = arith.truncf %0 : vector<64x128xf32> to vector<64x128xbf16>
    %c0_1 = arith.constant 0 : index
    %c0_2 = arith.constant 0 : index
    %2 = vector.load %arg2[%c0_1, %c0_2] : memref<128x256xbf16, #tpu.memory_space<vmem>>, vector<128x256xbf16>
    %cst = arith.constant dense<0.000000e+00> : vector<64x256xf32>
    %3 = tpu.matmul %1, %2, %cst {dimension_numbers = #tpu.dot_dimension_numbers<[1], [0], [0], [1], [0, 0, 1, 1], [], []>} : vector<64x128xbf16>, vector<128x256xbf16>, vector<64x256xf32> -> vector<64x256xf32>
    %c0_3 = arith.constant 0 : index
    %c0_4 = arith.constant 0 : index
    %4 = vector.load %arg3[%c0_3, %c0_4] : memref<1x256xf32, #tpu.memory_space<vmem>>, vector<1x256xf32>
    %5 = vector.broadcast %4 : vector<1x256xf32> to vector<64x256xf32>
    %6 = arith.addf %3, %5 : vector<64x256xf32>
    %cst_5 = arith.constant 0.000000e+00 : f32
    %7 = vector.broadcast %cst_5 : f32 to vector<64x256xf32>
    %8 = arith.maximumf %6, %7 : vector<64x256xf32>
    %9 = arith.truncf %8 : vector<64x256xf32> to vector<64x256xbf16>
    %c0_6 = arith.constant 0 : index
    %c0_7 = arith.constant 0 : index
    %10 = vector.load %arg4[%c0_6, %c0_7] : memref<256x128xbf16, #tpu.memory_space<vmem>>, vector<256x128xbf16>
    %cst_8 = arith.constant dense<0.000000e+00> : vector<64x128xf32>
    %11 = tpu.matmul %9, %10, %cst_8 {dimension_numbers = #tpu.dot_dimension_numbers<[1], [0], [0], [1], [0, 0, 1, 1], [], []>} : vector<64x256xbf16>, vector<256x128xbf16>, vector<64x128xf32> -> vector<64x128xf32>
    %c0_9 = arith.constant 0 : index
    %c0_10 = arith.constant 0 : index
    %12 = vector.load %arg5[%c0_9, %c0_10] : memref<1x128xf32, #tpu.memory_space<vmem>>, vector<1x128xf32>
    %13 = vector.broadcast %12 : vector<1x128xf32> to vector<64x128xf32>
    %14 = arith.addf %11, %13 : vector<64x128xf32>
    %cst_11 = arith.constant 0.000000e+00 : f32
    %15 = vector.broadcast %cst_11 : f32 to vector<64x128xf32>
    %16 = arith.maximumf %14, %15 : vector<64x128xf32>
    %17 = arith.truncf %16 : vector<64x128xf32> to vector<64x128xbf16>
    %c0_12 = arith.constant 0 : index
    %c0_13 = arith.constant 0 : index
    %18 = vector.load %arg6[%c0_12, %c0_13] : memref<128x256xbf16, #tpu.memory_space<vmem>>, vector<128x256xbf16>
    %cst_14 = arith.constant dense<0.000000e+00> : vector<64x256xf32>
    %19 = tpu.matmul %17, %18, %cst_14 {dimension_numbers = #tpu.dot_dimension_numbers<[1], [0], [0], [1], [0, 0, 1, 1], [], []>} : vector<64x128xbf16>, vector<128x256xbf16>, vector<64x256xf32> -> vector<64x256xf32>
    %c0_15 = arith.constant 0 : index
    %c0_16 = arith.constant 0 : index
    %20 = vector.load %arg7[%c0_15, %c0_16] : memref<1x256xf32, #tpu.memory_space<vmem>>, vector<1x256xf32>
    %21 = vector.broadcast %20 : vector<1x256xf32> to vector<64x256xf32>
    %22 = arith.addf %19, %21 : vector<64x256xf32>
    %23 = vector.extract_strided_slice %22 {offsets = [0, 0], sizes = [64, 16], strides = [1, 1]} : vector<64x256xf32> to vector<64x16xf32>
    %c0_17 = arith.constant 0 : index
    %c0_18 = arith.constant 0 : index
    %24 = vector.load %arg12[%c0_17, %c0_18] : memref<64x16xf32, #tpu.memory_space<vmem>>, vector<64x16xf32>
    tpu.vector_store %arg12[%c0_17, %c0_18], %23 {strides = array<i32>} : memref<64x16xf32, #tpu.memory_space<vmem>>, vector<64x16xf32>,
    %25 = vector.extract_strided_slice %22 {offsets = [0, 128], sizes = [64, 128], strides = [1, 1]} : vector<64x256xf32> to vector<64x128xf32>
    %cst_19 = arith.constant 0.000000e+00 : f32
    %26 = vector.broadcast %cst_19 : f32 to vector<64x128xf32>
    %27 = arith.maximumf %25, %26 : vector<64x128xf32>
    %28 = arith.truncf %27 : vector<64x128xf32> to vector<64x128xbf16>
    %c0_20 = arith.constant 0 : index
    %c0_21 = arith.constant 0 : index
    %29 = vector.load %arg8[%c0_20, %c0_21] : memref<128x256xbf16, #tpu.memory_space<vmem>>, vector<128x256xbf16>
    %cst_22 = arith.constant dense<0.000000e+00> : vector<64x256xf32>
    %30 = tpu.matmul %28, %29, %cst_22 {dimension_numbers = #tpu.dot_dimension_numbers<[1], [0], [0], [1], [0, 0, 1, 1], [], []>} : vector<64x128xbf16>, vector<128x256xbf16>, vector<64x256xf32> -> vector<64x256xf32>
    %c0_23 = arith.constant 0 : index
    %c0_24 = arith.constant 0 : index
    %31 = vector.load %arg9[%c0_23, %c0_24] : memref<1x256xf32, #tpu.memory_space<vmem>>, vector<1x256xf32>
    %32 = vector.broadcast %31 : vector<1x256xf32> to vector<64x256xf32>
    %33 = arith.addf %30, %32 : vector<64x256xf32>
    %cst_25 = arith.constant 0.000000e+00 : f32
    %34 = vector.broadcast %cst_25 : f32 to vector<64x256xf32>
    %35 = arith.maximumf %33, %34 : vector<64x256xf32>
    %36 = arith.truncf %35 : vector<64x256xf32> to vector<64x256xbf16>
    %c0_26 = arith.constant 0 : index
    %c0_27 = arith.constant 0 : index
    %37 = vector.load %arg10[%c0_26, %c0_27] : memref<256x128xbf16, #tpu.memory_space<vmem>>, vector<256x128xbf16>
    %cst_28 = arith.constant dense<0.000000e+00> : vector<64x128xf32>
    %38 = tpu.matmul %36, %37, %cst_28 {dimension_numbers = #tpu.dot_dimension_numbers<[1], [0], [0], [1], [0, 0, 1, 1], [], []>} : vector<64x256xbf16>, vector<256x128xbf16>, vector<64x128xf32> -> vector<64x128xf32>
    %c0_29 = arith.constant 0 : index
    %c0_30 = arith.constant 0 : index
    %39 = vector.load %arg11[%c0_29, %c0_30] : memref<1x128xf32, #tpu.memory_space<vmem>>, vector<1x128xf32>
    %40 = vector.broadcast %39 : vector<1x128xf32> to vector<64x128xf32>
    %41 = arith.addf %38, %40 : vector<64x128xf32>
    %c0_31 = arith.constant 0 : index
    %c0_32 = arith.constant 0 : index
    %42 = vector.load %arg13[%c0_31, %c0_32] : memref<64x128xf32, #tpu.memory_space<vmem>>, vector<64x128xf32>
    tpu.vector_store %arg13[%c0_31, %c0_32], %41 {strides = array<i32>} : memref<64x128xf32, #tpu.memory_space<vmem>>, vector<64x128xf32>,
    return
  }
  func.func @transform_0(%arg0: i32) -> (i32, i32) {
    %c0_i32 = arith.constant 0 : i32
    %c0_i32_0 = arith.constant 0 : i32
    return %arg0, %c0_i32 : i32, i32
  }
  func.func @transform_1(%arg0: i32) -> (i32, i32) {
    %c0_i32 = arith.constant 0 : i32
    %c0_i32_0 = arith.constant 0 : i32
    %c0_i32_1 = arith.constant 0 : i32
    return %c0_i32, %c0_i32_0 : i32, i32
  }
  func.func @transform_2(%arg0: i32) -> (i32, i32) {
    %c0_i32 = arith.constant 0 : i32
    %c0_i32_0 = arith.constant 0 : i32
    %c0_i32_1 = arith.constant 0 : i32
    return %c0_i32, %c0_i32_0 : i32, i32
  }
  func.func @transform_3(%arg0: i32) -> (i32, i32) {
    %c0_i32 = arith.constant 0 : i32
    %c0_i32_0 = arith.constant 0 : i32
    %c0_i32_1 = arith.constant 0 : i32
    return %c0_i32, %c0_i32_0 : i32, i32
  }
  func.func @transform_4(%arg0: i32) -> (i32, i32) {
    %c0_i32 = arith.constant 0 : i32
    %c0_i32_0 = arith.constant 0 : i32
    %c0_i32_1 = arith.constant 0 : i32
    return %c0_i32, %c0_i32_0 : i32, i32
  }
  func.func @transform_5(%arg0: i32) -> (i32, i32) {
    %c0_i32 = arith.constant 0 : i32
    %c0_i32_0 = arith.constant 0 : i32
    %c0_i32_1 = arith.constant 0 : i32
    return %c0_i32, %c0_i32_0 : i32, i32
  }
  func.func @transform_6(%arg0: i32) -> (i32, i32) {
    %c0_i32 = arith.constant 0 : i32
    %c0_i32_0 = arith.constant 0 : i32
    %c0_i32_1 = arith.constant 0 : i32
    return %c0_i32, %c0_i32_0 : i32, i32
  }
  func.func @transform_7(%arg0: i32) -> (i32, i32) {
    %c0_i32 = arith.constant 0 : i32
    %c0_i32_0 = arith.constant 0 : i32
    %c0_i32_1 = arith.constant 0 : i32
    return %c0_i32, %c0_i32_0 : i32, i32
  }
  func.func @transform_8(%arg0: i32) -> (i32, i32) {
    %c0_i32 = arith.constant 0 : i32
    %c0_i32_0 = arith.constant 0 : i32
    %c0_i32_1 = arith.constant 0 : i32
    return %c0_i32, %c0_i32_0 : i32, i32
  }
  func.func @transform_9(%arg0: i32) -> (i32, i32) {
    %c0_i32 = arith.constant 0 : i32
    %c0_i32_0 = arith.constant 0 : i32
    %c0_i32_1 = arith.constant 0 : i32
    return %c0_i32, %c0_i32_0 : i32, i32
  }
  func.func @transform_10(%arg0: i32) -> (i32, i32) {
    %c0_i32 = arith.constant 0 : i32
    %c0_i32_0 = arith.constant 0 : i32
    %c0_i32_1 = arith.constant 0 : i32
    return %c0_i32, %c0_i32_0 : i32, i32
  }
  func.func @transform_11(%arg0: i32) -> (i32, i32) {
    %c0_i32 = arith.constant 0 : i32
    %c0_i32_0 = arith.constant 0 : i32
    return %arg0, %c0_i32 : i32, i32
  }
  func.func @transform_12(%arg0: i32) -> (i32, i32) {
    %c0_i32 = arith.constant 0 : i32
    %c0_i32_0 = arith.constant 0 : i32
    return %arg0, %c0_i32 : i32, i32
  }
}

</mosaic_0001>

<bundles_post_ra>
// kernel: tpu_custom_call.1
= control target key start
LH: loop header
LB: loop body
LE: loop exit
PB: predicated region body
PF: predicated region fallthrough
CT: control target
= control target key end

     0   :  { %18 = vsyncpa [#allocation3], 0  ;;  %s2198_s0 = inlined_call_operand.hbm [shape: f32[64,128], index: 0, kind: input, shape index: {}]   ;;  %s2199_s1 = inlined_call_operand.hbm [shape: bf16[128,256], index: 1, kind: input, shape index: {}]   ;;  %s2200_s2 = inlined_call_operand.hbm [shape: f32[1,256], index: 2, kind: input, shape index: {}]   ;;  %s2201_s3 = inlined_call_operand.hbm [shape: bf16[256,128], index: 3, kind: input, shape index: {}]   ;;  %s2202_s4 = inlined_call_operand.hbm [shape: f32[1,128], index: 4, kind: input, shape index: {}]   ;;  %s2203_s5 = inlined_call_operand.hbm [shape: bf16[128,256], index: 5, kind: input, shape index: {}]   ;;  %s2204_s6 = inlined_call_operand.hbm [shape: f32[1,256], index: 6, kind: input, shape index: {}]   ;;  %s2205_s7 = inlined_call_operand.hbm [shape: bf16[128,256], index: 7, kind: input, shape index: {}]   ;;  %s2206_s8 = inlined_call_operand.hbm [shape: f32[1,256], index: 8, kind: input, shape index: {}]   ;;  %s2207_s9 = inlined_call_operand.hbm [shape: bf16[256,128], index: 9, kind: input, shape index: {}]   ;;  %s2208_s10 = inlined_call_operand.hbm [shape: f32[1,128], index: 10, kind: input, shape index: {}]   ;;  %s2209_s11 = inlined_call_operand.hbm [shape: f32[64,16], index: 11, kind: output, shape index: {0}]   ;;  %s2210_s12 = inlined_call_operand.hbm [shape: f32[64,128], index: 12, kind: output, shape index: {1}]  }
   0x1   :  { %19 = vsyncpa [#allocation6], 0 }
   0x2   :  { %20 = vsyncpa [#allocation9], 0 }
   0x3   :  { %21 = vsyncpa [#allocation12], 0 }
   0x4   :  { %22 = vsyncpa [#allocation15], 0 }
   0x5   :  { %23 = vsyncpa [#allocation18], 0 }
   0x6   :  { %24 = vsyncpa [#allocation4], 0 }
   0x7   :  { %25 = vsyncpa [#allocation22], 0  ;;  %s1866_s21 = smov [#allocation5]   ;;  %s1867_s23 = smov [#allocation8]  }
   0x8   :  { %s43_s22 = sshll.u32 %s1866_s21, 4  ;;  %s65_s24 = sshll.u32 %s1867_s23, 4  ;;  %s44_s22 = int_to_ptr.vmem [resolvable:$true] %s43_s22  ;;  %s1949_s24 = int_to_ptr.vmem [resolvable:$true] %s65_s24 }
   0x9   :  { %s1564_s27 = scalar_lea.hbm %s2199_s1, 2048 }
   0xa   :  { %p1565_p0 = scmp.ne.s32.totalorder %s2199_s1, %s1564_s27  ;;  %p1568_p1 = scmp.lt.u32.totalorder %s1564_s27, %s2199_s1 }
   0xc   :  { %p1570_p2 = pnand %p1568_p1, %p1565_p0 }
   0xe   :  { %1573 = shalt.err (!%p1570_p2)
}
   0xf   :  { %s1574_s14 = scalar_lea.vmem %s44_s22, 2048  ;;  %p1579_p4 = scmp.lt.s32.totalorder %s44_s22, %s44_s22 }
  0x10   :  { %p1575_p3 = scmp.ne.s32.totalorder %s44_s22, %s1574_s14  ;;  %p1580_p5 = scmp.lt.s32.totalorder %s1574_s14, %s1574_s14 }
  0x12   :  { %p1581_p6 = por %p1580_p5, %p1579_p4 }
  0x14   :  { %p1582_p7 = pnand %p1581_p6, %p1575_p3 }
  0x16   :  { %1585 = shalt.err (!%p1582_p7)
}
  0x17   :  { %s1868_s15 = smov 128   ;;  %s1869_s16 = smov 8  }
  0x18   :  { %49 = dma.hbm_to_vmem [thread:$0]  %s2199_s1, 2048, %s44_s22, [#allocation6], %s1868_s15, %s1868_s15, %s1869_s16  }
  0x19   :  { %s1586_s21 = scalar_lea.hbm %s2201_s3, 2048 }
  0x1a   :  { %p1587_p8 = scmp.ne.s32.totalorder %s2201_s3, %s1586_s21  ;;  %p1590_p9 = scmp.lt.u32.totalorder %s1586_s21, %s2201_s3 }
  0x1c   :  { %p1592_p10 = pnand %p1590_p9, %p1587_p8 }
  0x1e   :  { %1595 = shalt.err (!%p1592_p10)
}
  0x1f   :  { %s1596_s28 = scalar_lea.vmem %s1949_s24, 2048  ;;  %p1601_p12 = scmp.lt.s32.totalorder %s1949_s24, %s1949_s24 }
  0x20   :  { %p1597_p11 = scmp.ne.s32.totalorder %s1949_s24, %s1596_s28  ;;  %p1602_p13 = scmp.lt.s32.totalorder %s1596_s28, %s1596_s28 }
  0x22   :  { %p1603_p0 = por %p1602_p13, %p1601_p12 }
  0x24   :  { %p1604_p1 = pnand %p1603_p0, %p1597_p11 }
  0x26   :  { %1607 = shalt.err (!%p1604_p1)
}
  0x27   :  { %s1870_s1 = smov 64   ;;  %s1871_s22 = smov 4  }
  0x28   :  { %71 = dma.hbm_to_vmem [thread:$0]  %s2201_s3, 2048, %s1949_s24, [#allocation9], %s1870_s1, %s1870_s1, %s1871_s22  }
  0x29   :  { %s1872_s13 = smov [#allocation11]   ;;  %s1873_s17 = smov [#allocation14]  }
  0x2a   :  { %s87_s14 = sshll.u32 %s1872_s13, 4  ;;  %s109_s18 = sshll.u32 %s1873_s17, 4  ;;  %s88_s14 = int_to_ptr.vmem [resolvable:$true] %s87_s14  ;;  %s1986_s18 = int_to_ptr.vmem [resolvable:$true] %s109_s18 }
  0x2b   :  { %s1608_s21 = scalar_lea.hbm %s2203_s5, 2048 }
  0x2c   :  { %p1609_p2 = scmp.ne.s32.totalorder %s2203_s5, %s1608_s21  ;;  %p1612_p3 = scmp.lt.u32.totalorder %s1608_s21, %s2203_s5 }
  0x2e   :  { %p1614_p4 = pnand %p1612_p3, %p1609_p2 }
  0x30   :  { %1617 = shalt.err (!%p1614_p4)
}
  0x31   :  { %s1618_s3 = scalar_lea.vmem %s88_s14, 2048  ;;  %p1623_p6 = scmp.lt.s32.totalorder %s88_s14, %s88_s14 }
  0x32   :  { %p1619_p5 = scmp.ne.s32.totalorder %s88_s14, %s1618_s3  ;;  %p1624_p7 = scmp.lt.s32.totalorder %s1618_s3, %s1618_s3 }
  0x34   :  { %p1625_p8 = por %p1624_p7, %p1623_p6 }
  0x36   :  { %p1626_p9 = pnand %p1625_p8, %p1619_p5 }
  0x38   :  { %1629 = shalt.err (!%p1626_p9)
}
  0x39   :  { %93 = dma.hbm_to_vmem [thread:$0]  %s2203_s5, 2048, %s88_s14, [#allocation12], %s1868_s15, %s1868_s15, %s1869_s16  }
  0x3a   :  { %s1630_s13 = scalar_lea.hbm %s2205_s7, 2048 }
  0x3b   :  { %p1631_p10 = scmp.ne.s32.totalorder %s2205_s7, %s1630_s13  ;;  %p1634_p11 = scmp.lt.u32.totalorder %s1630_s13, %s2205_s7 }
  0x3d   :  { %p1636_p12 = pnand %p1634_p11, %p1631_p10 }
  0x3f   :  { %1639 = shalt.err (!%p1636_p12)
}
  0x40   :  { %s1640_s23 = scalar_lea.vmem %s1986_s18, 2048  ;;  %p1645_p0 = scmp.lt.s32.totalorder %s1986_s18, %s1986_s18 }
  0x41   :  { %p1641_p13 = scmp.ne.s32.totalorder %s1986_s18, %s1640_s23  ;;  %p1646_p1 = scmp.lt.s32.totalorder %s1640_s23, %s1640_s23 }
  0x43   :  { %p1647_p2 = por %p1646_p1, %p1645_p0 }
  0x45   :  { %p1648_p3 = pnand %p1647_p2, %p1641_p13 }
  0x47   :  { %1651 = shalt.err (!%p1648_p3)
}
  0x48   :  { %115 = dma.hbm_to_vmem [thread:$0]  %s2205_s7, 2048, %s1986_s18, [#allocation15], %s1868_s15, %s1868_s15, %s1869_s16  }
  0x49   :  { %s1874_s25 = smov [#allocation17]   ;;  %s1875_s27 = smov [#allocation2]  }
  0x4a   :  { %s131_s26 = sshll.u32 %s1874_s25, 4  ;;  %s31_s3 = sshll.u32 %s1875_s27, 4  ;;  %s132_s26 = int_to_ptr.vmem [resolvable:$true] %s131_s26  ;;  %s2023_s3 = int_to_ptr.vmem [resolvable:$true] %s31_s3 }
  0x4b   :  { %s1652_s29 = scalar_lea.hbm %s2207_s9, 2048 }
  0x4c   :  { %p1653_p4 = scmp.ne.s32.totalorder %s2207_s9, %s1652_s29  ;;  %p1656_p5 = scmp.lt.u32.totalorder %s1652_s29, %s2207_s9 }
  0x4e   :  { %p1658_p6 = pnand %p1656_p5, %p1653_p4 }
  0x50   :  { %1661 = shalt.err (!%p1658_p6)
}
  0x51   :  { %s1662_s7 = scalar_lea.vmem %s132_s26, 2048  ;;  %p1667_p8 = scmp.lt.s32.totalorder %s132_s26, %s132_s26 }
  0x52   :  { %p1663_p7 = scmp.ne.s32.totalorder %s132_s26, %s1662_s7  ;;  %p1668_p9 = scmp.lt.s32.totalorder %s1662_s7, %s1662_s7 }
  0x54   :  { %p1669_p10 = por %p1668_p9, %p1667_p8 }
  0x56   :  { %p1670_p11 = pnand %p1669_p10, %p1663_p7 }
  0x58   :  { %1673 = shalt.err (!%p1670_p11)
}
  0x59   :  { %137 = dma.hbm_to_vmem [thread:$0]  %s2207_s9, 2048, %s132_s26, [#allocation18], %s1870_s1, %s1870_s1, %s1871_s22  }
  0x5a   :  { %s1674_s5 = scalar_lea.hbm %s2198_s0, 1024 }
  0x5b   :  { %p1675_p12 = scmp.ne.s32.totalorder %s2198_s0, %s1674_s5  ;;  %p1678_p13 = scmp.lt.u32.totalorder %s1674_s5, %s2198_s0 }
  0x5d   :  { %p1680_p0 = pnand %p1678_p13, %p1675_p12 }
  0x5f   :  { %1683 = shalt.err (!%p1680_p0)
}
  0x60   :  { %s1684_s28 = scalar_lea.vmem %s2023_s3, 1024  ;;  %p1689_p2 = scmp.lt.s32.totalorder %s2023_s3, %s2023_s3 }
  0x61   :  { %p1685_p1 = scmp.ne.s32.totalorder %s2023_s3, %s1684_s28  ;;  %p1690_p3 = scmp.lt.s32.totalorder %s1684_s28, %s1684_s28 }
  0x63   :  { %p1691_p4 = por %p1690_p3, %p1689_p2 }
  0x65   :  { %p1692_p5 = pnand %p1691_p4, %p1685_p1 }
  0x67   :  { %1695 = shalt.err (!%p1692_p5)
}
  0x68   :  { %37 = dma.hbm_to_vmem [thread:$0]  %s2198_s0, 1024, %s2023_s3, [#allocation3], %s1868_s15, %s1868_s15, %s1869_s16  }
  0x69   :  { %s1876_s22 = smov [#allocation7]   ;;  %s1877_s29 = smov [#allocation10]  }
  0x6a   :  { %s56_s26 = sshll.u32 %s1876_s22, 4  ;;  %s78_s30 = sshll.u32 %s1877_s29, 4  ;;  %s57_s26 = int_to_ptr.vmem [resolvable:$true] %s56_s26  ;;  %s79_s30 = int_to_ptr.vmem [resolvable:$true] %s78_s30 }
  0x6b   :  { %s1696_s19 = scalar_lea.hbm %s2200_s2, 32 }
  0x6c   :  { %p1697_p6 = scmp.ne.s32.totalorder %s2200_s2, %s1696_s19  ;;  %p1700_p7 = scmp.lt.u32.totalorder %s1696_s19, %s2200_s2 }
  0x6e   :  { %p1702_p8 = pnand %p1700_p7, %p1697_p6 }
  0x70   :  { %1705 = shalt.err (!%p1702_p8)
}
  0x71   :  { %s1706_s0 = scalar_lea.vmem %s57_s26, 32  ;;  %p1711_p10 = scmp.lt.s32.totalorder %s57_s26, %s57_s26 }
  0x72   :  { %p1707_p9 = scmp.ne.s32.totalorder %s57_s26, %s1706_s0  ;;  %p1712_p11 = scmp.lt.s32.totalorder %s1706_s0, %s1706_s0 }
  0x74   :  { %p1713_p12 = por %p1712_p11, %p1711_p10 }
  0x76   :  { %p1714_p13 = pnand %p1713_p12, %p1707_p9 }
  0x78   :  { %1717 = shalt.err (!%p1714_p13)
}
  0x79   :  { %59 = dma.hbm_to_vmem [thread:$0]  %s2200_s2, 32, %s57_s26, [#allocation6]  }
  0x7a   :  { %s1718_s25 = scalar_lea.hbm %s2202_s4, 16 }
  0x7b   :  { %p1719_p0 = scmp.ne.s32.totalorder %s2202_s4, %s1718_s25  ;;  %p1722_p1 = scmp.lt.u32.totalorder %s1718_s25, %s2202_s4 }
  0x7d   :  { %p1724_p2 = pnand %p1722_p1, %p1719_p0 }
  0x7f   :  { %1727 = shalt.err (!%p1724_p2)
}
  0x80   :  { %s1728_s1 = scalar_lea.vmem %s79_s30, 16  ;;  %s1732_s22 = scalar_lea.vmem %s79_s30, 32 }
  0x81   :  { %p1729_p3 = scmp.ne.s32.totalorder %s79_s30, %s1728_s1  ;;  %p1733_p4 = scmp.lt.s32.totalorder %s79_s30, %s79_s30 }
  0x82   :  { %p1734_p5 = scmp.lt.s32.totalorder %s1732_s22, %s1728_s1 }
  0x84   :  { %p1735_p6 = por %p1734_p5, %p1733_p4 }
  0x86   :  { %p1736_p7 = pnand %p1735_p6, %p1729_p3 }
  0x88   :  { %1739 = shalt.err (!%p1736_p7)
}
  0x89   :  { %81 = dma.hbm_to_vmem [thread:$0]  %s2202_s4, 16, %s79_s30, [#allocation9]  }
  0x8a   :  { %s1878_s29 = smov [#allocation13]   ;;  %s1879_s17 = smov [#allocation16]  }
  0x8b   :  { %s100_s13 = sshll.u32 %s1878_s29, 4  ;;  %s122_s19 = sshll.u32 %s1879_s17, 4  ;;  %s101_s13 = int_to_ptr.vmem [resolvable:$true] %s100_s13  ;;  %s123_s19 = int_to_ptr.vmem [resolvable:$true] %s122_s19 }
  0x8c   :  { %s1740_s20 = scalar_lea.hbm %s2204_s6, 32 }
  0x8d   :  { %p1741_p8 = scmp.ne.s32.totalorder %s2204_s6, %s1740_s20  ;;  %p1744_p9 = scmp.lt.u32.totalorder %s1740_s20, %s2204_s6 }
  0x8f   :  { %p1746_p10 = pnand %p1744_p9, %p1741_p8 }
  0x91   :  { %1749 = shalt.err (!%p1746_p10)
}
  0x92   :  { %s1750_s4 = scalar_lea.vmem %s101_s13, 32  ;;  %p1755_p12 = scmp.lt.s32.totalorder %s101_s13, %s101_s13 }
  0x93   :  { %p1751_p11 = scmp.ne.s32.totalorder %s101_s13, %s1750_s4  ;;  %p1756_p13 = scmp.lt.s32.totalorder %s1750_s4, %s1750_s4 }
  0x95   :  { %p1757_p0 = por %p1756_p13, %p1755_p12 }
  0x97   :  { %p1758_p1 = pnand %p1757_p0, %p1751_p11 }
  0x99   :  { %1761 = shalt.err (!%p1758_p1)
}
  0x9a   :  { %103 = dma.hbm_to_vmem [thread:$0]  %s2204_s6, 32, %s101_s13, [#allocation12]  }
  0x9b   :  { %s1762_s27 = scalar_lea.hbm %s2206_s8, 32 }
  0x9c   :  { %p1763_p2 = scmp.ne.s32.totalorder %s2206_s8, %s1762_s27  ;;  %p1766_p3 = scmp.lt.u32.totalorder %s1762_s27, %s2206_s8 }
  0x9e   :  { %p1768_p4 = pnand %p1766_p3, %p1763_p2 }
  0xa0   :  { %1771 = shalt.err (!%p1768_p4)
}
  0xa1   :  { %s1772_s22 = scalar_lea.vmem %s123_s19, 32  ;;  %p1777_p6 = scmp.lt.s32.totalorder %s123_s19, %s123_s19 }
  0xa2   :  { %p1773_p5 = scmp.ne.s32.totalorder %s123_s19, %s1772_s22  ;;  %p1778_p7 = scmp.lt.s32.totalorder %s1772_s22, %s1772_s22 }
  0xa4   :  { %p1779_p8 = por %p1778_p7, %p1777_p6 }
  0xa6   :  { %p1780_p9 = pnand %p1779_p8, %p1773_p5 }
  0xa8   :  { %1783 = shalt.err (!%p1780_p9)
}
  0xa9   :  { %125 = dma.hbm_to_vmem [thread:$0]  %s2206_s8, 32, %s123_s19, [#allocation15]  }
  0xaa   :  { %s1880_s26 = smov [#allocation19]   ;;  %s1784_s7 = scalar_lea.hbm %s2208_s10, 16 }
  0xab   :  { %s144_s29 = sshll.u32 %s1880_s26, 4  ;;  %p1785_p10 = scmp.ne.s32.totalorder %s2208_s10, %s1784_s7  ;;  %s145_s29 = int_to_ptr.vmem [resolvable:$true] %s144_s29 }
  0xac   :  { %p1788_p11 = scmp.lt.u32.totalorder %s1784_s7, %s2208_s10 }
  0xae   :  { %p1790_p12 = pnand %p1788_p11, %p1785_p10 }
  0xb0   :  { %1793 = shalt.err (!%p1790_p12)
}
  0xb1   :  { %s1794_s3 = scalar_lea.vmem %s145_s29, 16  ;;  %s1798_s8 = scalar_lea.vmem %s145_s29, 32 }
  0xb2   :  { %p1795_p13 = scmp.ne.s32.totalorder %s145_s29, %s1794_s3  ;;  %p1799_p0 = scmp.lt.s32.totalorder %s145_s29, %s145_s29 }
  0xb3   :  { %p1800_p1 = scmp.lt.s32.totalorder %s1798_s8, %s1794_s3 }
  0xb5   :  { %p1801_p2 = por %p1800_p1, %p1799_p0 }
  0xb7   :  { %p1802_p3 = pnand %p1801_p2, %p1795_p13 }
  0xb9   :  { %1805 = shalt.err (!%p1802_p3)
}
  0xba   :  { %147 = dma.hbm_to_vmem [thread:$0]  %s2208_s10, 16, %s145_s29, [#allocation18]  }
  0xbb   :  { %1850 = dma.done.wait [#allocation3], 1024  }
  0xbc   :  { %1851 = vsyncadd [#allocation3], 4294966272 }
  0xbd   :  { %1852 = dma.done.wait [#allocation6], 2080  }
  0xbe   :  { %1853 = vsyncadd [#allocation6], 4294965216 }
  0xbf   :  { %1854 = dma.done.wait [#allocation9], 2064  }
  0xc0   :  { %1855 = vsyncadd [#allocation9], 4294965232 }
  0xc1   :  { %1856 = dma.done.wait [#allocation12], 2080  }
  0xc2   :  { %1857 = vsyncadd [#allocation12], 4294965216 }
  0xc3   :  { %1858 = dma.done.wait [#allocation15], 2080  }
  0xc4   :  { %1859 = vsyncadd [#allocation15], 4294965216 }
  0xc5   :  { %1860 = dma.done.wait [#allocation18], 2064  }
  0xc6   :  { %1861 = vsyncadd [#allocation18], 4294965232  ;;  %v1881_v0 = vmov 0   ;;  %v1460_v1 = vld [vmem:[#allocation5 + $0x4] ss:$8 sps:$4 sm:$0xff]   ;;  %v1488_v16 = vld [vmem:[#allocation8 + $0x50] sm:$0xff]   ;;  %v212_v57 = vlaneseq }
  0xc7   :  { %334 = vmatprep.mubr.bf16.mxu0 %v1881_v0  ;;  %v1462_v2 = vld [vmem:[#allocation5] ss:$8 sps:$4 sm:$0xff]   ;;  %302 = vmatprep.subr.bf16.mxu0 %v1460_v1  ;;  %v1463_v3 = vld [vmem:[#allocation5 + $0x14] ss:$8 sps:$4 sm:$0xff]   ;;  %v1465_v4 = vld [vmem:[#allocation5 + $0x10] ss:$8 sps:$4 sm:$0xff]  }
  0xc8   :  { %303 = vmatpush1.bf16.msra.mxu0 %v1462_v2  ;;  %v1466_v5 = vld [vmem:[#allocation5 + $0x24] ss:$8 sps:$4 sm:$0xff]   ;;  %v1468_v6 = vld [vmem:[#allocation5 + $0x20] ss:$8 sps:$4 sm:$0xff]   ;;  %v1469_v7 = vld [vmem:[#allocation5 + $0x34] ss:$8 sps:$4 sm:$0xff]  }
  0xc9   :  { %304 = vmatprep.subr.bf16.mxu0 %v1463_v3  ;;  %v1471_v8 = vld [vmem:[#allocation5 + $0x30] ss:$8 sps:$4 sm:$0xff]   ;;  %v1472_v9 = vld [vmem:[#allocation5 + $0x44] ss:$8 sps:$4 sm:$0xff]   ;;  %v1474_v10 = vld [vmem:[#allocation5 + $0x40] ss:$8 sps:$4 sm:$0xff]  }
  0xca   :  { %v1475_v11 = vld [vmem:[#allocation5 + $0x54] ss:$8 sps:$4 sm:$0xff]   ;;  %v1484_v12 = vld [vmem:[#allocation8 + $0x40] sm:$0xff]   ;;  %v1486_v14 = vld [vmem:[#allocation8 + $0x48] sm:$0xff]   ;;  %v213_v58 = vshrl.u32 %v212_v57, 7  ;;  %vm792_vm0 = vcmask 130048  }
  0xcb   :  { %v1485_v13 = vld [vmem:[#allocation8] sm:$0xff]   ;;  %1346 = vmatprep.subr.bf16.mxu1 %v1484_v12  ;;  %v1487_v15 = vld [vmem:[#allocation8 + $0x8] sm:$0xff]   ;;  %v1489_v20 = vld [vmem:[#allocation8 + $0x10] sm:$0xff]   ;;  %s1882_s10 = smov [#allocation20]  }
  0xcc   :  { %305 = vmatpush1.bf16.msra.mxu0 %v1465_v4  ;;  %1347 = vmatpush3.bf16.msra.mxu1 %v1485_v13  ;;  %v1477_v17 = vld [vmem:[#allocation5 + $0x50] ss:$8 sps:$4 sm:$0xff]   ;;  %v1478_v18 = vld [vmem:[#allocation5 + $0x64] ss:$8 sps:$4 sm:$0xff]   ;;  %v1480_v19 = vld [vmem:[#allocation5 + $0x60] ss:$8 sps:$4 sm:$0xff]  }
  0xcd   :  { %306 = vmatprep.subr.bf16.mxu0 %v1466_v5  ;;  %1348 = vmatprep.subr.bf16.mxu1 %v1486_v14  ;;  %v1490_v21 = vld [vmem:[#allocation8 + $0x58] sm:$0xff]   ;;  %v1492_v24 = vld [vmem:[#allocation8 + $0x60] sm:$0xff]   ;;  %v1494_v29 = vld [vmem:[#allocation8 + $0x68] sm:$0xff]   ;;  %v2125_v59 = vsub.s32 0, %v213_v58  ;;  %v2127_v61 = vsub.s32 1, %v213_v58  ;;  %s1231_s4 = sshll.u32 %s1882_s10, 4  ;;  %s1232_s4 = int_to_ptr.vmem [resolvable:$true] %s1231_s4 }
  0xce   :  { %v1481_v22 = vld [vmem:[#allocation5 + $0x74] ss:$8 sps:$4 sm:$0xff]   ;;  %v1483_v25 = vld [vmem:[#allocation5 + $0x70] ss:$8 sps:$4 sm:$0xff]   ;;  %v182_v26 = vld [vmem:[#allocation2] sm:$0xff]  ;;  %s1806_s30 = scalar_lea.vmem %s1232_s4, 1024  ;;  %p1811_p5 = scmp.lt.s32.totalorder %s1232_s4, %s1232_s4 }
  0xcf   :  { %v1491_v23 = vld [vmem:[#allocation8 + $0x18] sm:$0xff]   ;;  %v183_v27 = vld [vmem:[#allocation2 + $0x8] sm:$0xff]  ;;  %v184_v31 = vld [vmem:[#allocation2 + $0x10] sm:$0xff]  ;;  %p1807_p4 = scmp.ne.s32.totalorder %s1232_s4, %s1806_s30  ;;  %p1812_p6 = scmp.lt.s32.totalorder %s1806_s30, %s1806_s30 }
  0xd0   :  { %307 = vmatpush1.bf16.msra.mxu0 %v1468_v6  ;;  %1349 = vmatpush3.bf16.msra.mxu1 %v1487_v15  ;;  %v1493_v28 = vld [vmem:[#allocation8 + $0x20] sm:$0xff]   ;;  %v190_v30 = vpack.c.bf16 %v183_v27, %v182_v26  ;;  %v185_v32 = vld [vmem:[#allocation2 + $0x18] sm:$0xff]  ;;  %v188_v37 = vld [vmem:[#allocation2 + $0x30] sm:$0xff] }
  0xd1   :  { %308 = vmatprep.subr.bf16.mxu0 %v1469_v7  ;;  %1350 = vmatprep.subr.bf16.mxu1 %v1488_v16  ;;  %v191_v33 = vpack.c.bf16 %v185_v32, %v184_v31  ;;  %v186_v34 = vld [vmem:[#allocation2 + $0x20] sm:$0xff]  ;;  %v187_v35 = vld [vmem:[#allocation2 + $0x28] sm:$0xff]  ;;  %v189_v38 = vld [vmem:[#allocation2 + $0x38] sm:$0xff]  ;;  %p1813_p7 = por %p1812_p6, %p1811_p5 }
  0xd2   :  { %v192_v36 = vpack.c.bf16 %v187_v35, %v186_v34  ;;  %v193_v39 = vpack.c.bf16 %v189_v38, %v188_v37  ;;  %v1495_v40 = vld [vmem:[#allocation8 + $0x28] sm:$0xff]   ;;  %v1496_v41 = vld [vmem:[#allocation8 + $0x70] sm:$0xff]   ;;  %v1498_v43 = vld [vmem:[#allocation8 + $0x78] sm:$0xff]  }
  0xd3   :  { %v1497_v42 = vld [vmem:[#allocation8 + $0x30] sm:$0xff]   ;;  %v1499_v44 = vld [vmem:[#allocation8 + $0x38] sm:$0xff]   ;;  %v1500_v45 = vld [vmem:[#allocation11] ss:$8 sps:$4 sm:$0xff]   ;;  %p1814_p8 = pnand %p1813_p7, %p1807_p4 }
  0xd4   :  { %309 = vmatpush1.bf16.msra.mxu0 %v1471_v8  ;;  %1351 = vmatpush3.bf16.msra.mxu1 %v1489_v20  ;;  %v1502_v46 = vld [vmem:[#allocation11 + $0x4] ss:$8 sps:$4 sm:$0xff]   ;;  %v1505_v47 = vld [vmem:[#allocation11 + $0x14] ss:$8 sps:$4 sm:$0xff]   ;;  %v1503_v48 = vld [vmem:[#allocation11 + $0x10] ss:$8 sps:$4 sm:$0xff]  }
  0xd5   :  { %310 = vmatprep.subr.bf16.mxu0 %v1472_v9  ;;  %1352 = vmatprep.subr.bf16.mxu1 %v1490_v21  ;;  %v1508_v49 = vld [vmem:[#allocation11 + $0x24] ss:$8 sps:$4 sm:$0xff]   ;;  %v1506_v50 = vld [vmem:[#allocation11 + $0x20] ss:$8 sps:$4 sm:$0xff]   ;;  %v1511_v51 = vld [vmem:[#allocation11 + $0x34] ss:$8 sps:$4 sm:$0xff]  }
  0xd6   :  { %v1509_v52 = vld [vmem:[#allocation11 + $0x30] ss:$8 sps:$4 sm:$0xff]   ;;  %v1514_v53 = vld [vmem:[#allocation11 + $0x44] ss:$8 sps:$4 sm:$0xff]   ;;  %v1512_v54 = vld [vmem:[#allocation11 + $0x40] ss:$8 sps:$4 sm:$0xff]  }
  0xd7   :  { %v1517_v55 = vld [vmem:[#allocation11 + $0x54] ss:$8 sps:$4 sm:$0xff]   ;;  %v1515_v56 = vld [vmem:[#allocation11 + $0x50] ss:$8 sps:$4 sm:$0xff]   ;;  %v1520_v57 = vld [vmem:[#allocation11 + $0x64] ss:$8 sps:$4 sm:$0xff]  }
  0xd8   :  { %311 = vmatpush1.bf16.msra.mxu0 %v1474_v10  ;;  %1353 = vmatpush3.bf16.msra.mxu1 %v1491_v23  ;;  %v210_v60 = vld [vmem:[#allocation7] sm:$0x3]  ;;  %v1518_v58 = vld [vmem:[#allocation11 + $0x60] ss:$8 sps:$4 sm:$0xff]  }
  0xd9   :  { %312 = vmatprep.subr.bf16.mxu0 %v1475_v11  ;;  %1354 = vmatprep.subr.bf16.mxu1 %v1492_v24  ;;  %v215_v62 = vrot.slane %v210_v60, %v2125_v59  ;;  %v219_v63 = vrot.slane %v210_v60, %v2127_v61  ;;  %v1523_v60 = vld [vmem:[#allocation11 + $0x74] ss:$8 sps:$4 sm:$0xff]  }
  0xdc   :  { %313 = vmatpush1.bf16.msra.mxu0 %v1477_v17  ;;  %1355 = vmatpush3.bf16.msra.mxu1 %v1493_v28 }
  0xdd   :  { %314 = vmatprep.subr.bf16.mxu0 %v1478_v18  ;;  %1356 = vmatprep.subr.bf16.mxu1 %v1494_v29 }
  0xe0   :  { %315 = vmatpush1.bf16.msra.mxu0 %v1480_v19  ;;  %1357 = vmatpush3.bf16.msra.mxu1 %v1495_v40 }
  0xe1   :  { %316 = vmatprep.subr.bf16.mxu0 %v1481_v22  ;;  %1358 = vmatprep.subr.bf16.mxu1 %v1496_v41 }
  0xe4   :  { %317 = vmatpush1.bf16.msra.mxu0 %v1483_v25  ;;  %1359 = vmatpush3.bf16.msra.mxu1 %v1497_v42 }
  0xe5   :  { %1360 = vmatprep.subr.bf16.mxu1 %v1498_v43  ;;  %719 = vmatprep.subr.bf16.mxu0 %v1502_v46 }
  0xe7   :  { %335 = vmatmul.mubr.bf16.vlgmr.msra.gmra.mrb[0].mxu0 %v190_v30 }
  0xe8   :  { %344 = vmatprep.mubr.bf16.mxu0 %v1881_v0  ;;  %1361 = vmatpush3.bf16.msra.mxu1 %v1499_v44 }
  0xe9   :  { %720 = vmatpush1.bf16.msra.mxu0 %v1500_v45 }
  0xea   :  { %721 = vmatprep.subr.bf16.mxu0 %v1505_v47 }
  0xed   :  { %722 = vmatpush1.bf16.msra.mxu0 %v1503_v48 }
  0xee   :  { %723 = vmatprep.subr.bf16.mxu0 %v1508_v49 }
  0xef   :  { %345 = vmatmul.mubr.bf16.gmra.mrb[4].mxu0 %v191_v33 }
  0xf0   :  { %354 = vmatprep.mubr.bf16.mxu0 %v1881_v0 }
  0xf1   :  { %724 = vmatpush1.bf16.msra.mxu0 %v1506_v50 }
  0xf2   :  { %725 = vmatprep.subr.bf16.mxu0 %v1511_v51 }
  0xf5   :  { %726 = vmatpush1.bf16.msra.mxu0 %v1509_v52 }
  0xf6   :  { %727 = vmatprep.subr.bf16.mxu0 %v1514_v53 }
  0xf7   :  { %355 = vmatmul.mubr.bf16.gmra.mrb[8].mxu0 %v192_v36 }
  0xf8   :  { %364 = vmatprep.mubr.bf16.mxu0 %v1881_v0 }
  0xf9   :  { %728 = vmatpush1.bf16.msra.mxu0 %v1512_v54 }
  0xfa   :  { %729 = vmatprep.subr.bf16.mxu0 %v1517_v55 }
  0xfd   :  { %730 = vmatpush1.bf16.msra.mxu0 %v1515_v56 }
  0xfe   :  { %731 = vmatprep.subr.bf16.mxu0 %v1520_v57  ;;  %v1544_v57 = vld [vmem:[#allocation14 + $0x64] ss:$8 sps:$4 sm:$0xff]  }
  0xff   :  { %365 = vmatmul.mubr.bf16.gmra.mrb[12].mxu0 %v193_v39 }
 0x100   :  { %751 = vmatprep.mubr.bf16.mxu0 %v1881_v0 }
 0x101   :  { %732 = vmatpush1.bf16.msra.mxu0 %v1518_v58  ;;  %v1542_v58 = vld [vmem:[#allocation14 + $0x60] ss:$8 sps:$4 sm:$0xff]  }
 0x102   :  { %733 = vmatprep.subr.bf16.mxu0 %v1523_v60  ;;  %v1547_v60 = vld [vmem:[#allocation14 + $0x74] ss:$8 sps:$4 sm:$0xff]  }
 0x1ba   :  { %v336_v1 = vpop.f32.mrb[0].mxu0 }
 0x1bb   :  { %v337_v2 = vadd.f32 %v336_v1, %v215_v62  ;;  %v338_v3 = vpop.f32.mrb[1].mxu0  ;;  %v1521_v1 = vld [vmem:[#allocation11 + $0x70] ss:$8 sps:$4 sm:$0xff]  }
 0x1bc   :  { %v339_v4 = vadd.f32 %v338_v3, %v219_v63  ;;  %v340_v5 = vpop.f32.mrb[2].mxu0  ;;  %734 = vmatpush1.bf16.msra.mxu0 %v1521_v1  ;;  %v1527_v3 = vld [vmem:[#allocation14 + $0x10] ss:$8 sps:$4 sm:$0xff]  }
 0x1bd   :  { %v341_v6 = vadd.f32 %v340_v5, %v215_v62  ;;  %v342_v7 = vpop.f32.mrb[3].mxu0  ;;  %v375_v9 = vmax.f32 %v337_v2, 0.0  ;;  %v1529_v2 = vld [vmem:[#allocation14 + $0x14] ss:$8 sps:$4 sm:$0xff]   ;;  %v1530_v5 = vld [vmem:[#allocation14 + $0x20] ss:$8 sps:$4 sm:$0xff]  }
 0x1be   :  { %v343_v8 = vadd.f32 %v342_v7, %v219_v63  ;;  %v376_v11 = vmax.f32 %v339_v4, 0.0  ;;  %v1532_v4 = vld [vmem:[#allocation14 + $0x24] ss:$8 sps:$4 sm:$0xff]   ;;  %v1533_v7 = vld [vmem:[#allocation14 + $0x30] ss:$8 sps:$4 sm:$0xff]  }
 0x1bf   :  { %v377_v10 = vmax.f32 %v341_v6, 0.0  ;;  %v1535_v6 = vld [vmem:[#allocation14 + $0x34] ss:$8 sps:$4 sm:$0xff]   ;;  %v1545_v1 = vld [vmem:[#allocation14 + $0x70] ss:$8 sps:$4 sm:$0xff]  }
 0x1c0   :  { %v378_v12 = vmax.f32 %v343_v8, 0.0  ;;  %v1538_v8 = vld [vmem:[#allocation14 + $0x44] ss:$8 sps:$4 sm:$0xff]  }
 0x1c1   :  { %v391_v13 = vpack.c.bf16 %v377_v10, %v375_v9  ;;  %v1536_v9 = vld [vmem:[#allocation14 + $0x40] ss:$8 sps:$4 sm:$0xff]   ;;  %v1541_v10 = vld [vmem:[#allocation14 + $0x54] ss:$8 sps:$4 sm:$0xff]  }
 0x1c2   :  { %v346_v14 = vpop.f32.mrb[4].mxu0  ;;  %v392_v15 = vpack.c.bf16 %v378_v12, %v376_v11  ;;  %v1539_v11 = vld [vmem:[#allocation14 + $0x50] ss:$8 sps:$4 sm:$0xff]  }
 0x1c3   :  { %v347_v16 = vadd.f32 %v346_v14, %v215_v62  ;;  %v348_v17 = vpop.f32.mrb[5].mxu0 }
 0x1c4   :  { %v349_v18 = vadd.f32 %v348_v17, %v219_v63  ;;  %v350_v19 = vpop.f32.mrb[6].mxu0  ;;  %566 = vmatprep.mubr.bf16.mxu1 %v392_v15 }
 0x1c5   :  { %v351_v20 = vadd.f32 %v350_v19, %v215_v62  ;;  %v352_v21 = vpop.f32.mrb[7].mxu0  ;;  %567 = vmatmul.mubr.bf16.vlgmr.msra.gmra.mrb[0].mxu1 %v391_v13  ;;  %v379_v23 = vmax.f32 %v347_v16, 0.0  ;;  %v1280_v13 = vld [vmem:[#allocation10] ss:$0 sm:$0xff] }
 0x1c6   :  { %v353_v22 = vadd.f32 %v352_v21, %v219_v63  ;;  %v380_v25 = vmax.f32 %v349_v18, 0.0 }
 0x1c7   :  { %v381_v24 = vmax.f32 %v351_v20, 0.0 }
 0x1c8   :  { %v382_v26 = vmax.f32 %v353_v22, 0.0 }
 0x1c9   :  { %v393_v27 = vpack.c.bf16 %v381_v24, %v379_v23 }
 0x1ca   :  { %v394_v28 = vpack.c.bf16 %v382_v26, %v380_v25  ;;  %v356_v29 = vpop.f32.mrb[8].mxu0 }
 0x1cb   :  { %v357_v30 = vadd.f32 %v356_v29, %v215_v62  ;;  %v358_v31 = vpop.f32.mrb[9].mxu0 }
 0x1cc   :  { %v359_v32 = vadd.f32 %v358_v31, %v219_v63  ;;  %v360_v33 = vpop.f32.mrb[10].mxu0  ;;  %574 = vmatprep.mubr.bf16.mxu1 %v394_v28 }
 0x1cd   :  { %v361_v34 = vadd.f32 %v360_v33, %v215_v62  ;;  %v362_v35 = vpop.f32.mrb[11].mxu0  ;;  %575 = vmatmul.mubr.bf16.gmra.mrb[4].mxu1 %v393_v27  ;;  %v383_v37 = vmax.f32 %v357_v30, 0.0 }
 0x1ce   :  { %v363_v36 = vadd.f32 %v362_v35, %v219_v63  ;;  %v384_v39 = vmax.f32 %v359_v32, 0.0 }
 0x1cf   :  { %v385_v38 = vmax.f32 %v361_v34, 0.0 }
 0x1d0   :  { %v386_v40 = vmax.f32 %v363_v36, 0.0 }
 0x1d1   :  { %v395_v41 = vpack.c.bf16 %v385_v38, %v383_v37 }
 0x1d2   :  { %v396_v42 = vpack.c.bf16 %v386_v40, %v384_v39  ;;  %v366_v43 = vpop.f32.mrb[12].mxu0 }
 0x1d3   :  { %v367_v44 = vadd.f32 %v366_v43, %v215_v62  ;;  %v368_v45 = vpop.f32.mrb[13].mxu0 }
 0x1d4   :  { %v369_v46 = vadd.f32 %v368_v45, %v219_v63  ;;  %v370_v47 = vpop.f32.mrb[14].mxu0  ;;  %582 = vmatprep.mubr.bf16.mxu1 %v396_v42 }
 0x1d5   :  { %v371_v48 = vadd.f32 %v370_v47, %v215_v62  ;;  %v372_v49 = vpop.f32.mrb[15].mxu0  ;;  %583 = vmatmul.mubr.bf16.gmra.mrb[8].mxu1 %v395_v41  ;;  %v387_v51 = vmax.f32 %v367_v44, 0.0  ;;  %v1524_v62 = vld [vmem:[#allocation14] ss:$8 sps:$4 sm:$0xff]  }
 0x1d6   :  { %v373_v50 = vadd.f32 %v372_v49, %v219_v63  ;;  %v388_v53 = vmax.f32 %v369_v46, 0.0  ;;  %v1526_v63 = vld [vmem:[#allocation14 + $0x4] ss:$8 sps:$4 sm:$0xff]  }
 0x1d7   :  { %v389_v52 = vmax.f32 %v371_v48, 0.0  ;;  %921 = vmatprep.subr.bf16.mxu1 %v1526_v63  ;;  %v1549_v63 = vld [vmem:[#allocation17] sm:$0xff]  }
 0x1d8   :  { %v390_v54 = vmax.f32 %v373_v50, 0.0  ;;  %922 = vmatpush1.bf16.msra.mxu1 %v1524_v62  ;;  %v1548_v62 = vld [vmem:[#allocation17 + $0x40] sm:$0xff]  }
 0x1d9   :  { %v397_v55 = vpack.c.bf16 %v389_v52, %v387_v51  ;;  %923 = vmatprep.subr.bf16.mxu1 %v1529_v2  ;;  %v1550_v2 = vld [vmem:[#allocation17 + $0x48] sm:$0xff]   ;;  %1386 = vmatprep.subr.bf16.mxu0 %v1548_v62 }
 0x1da   :  { %v398_v56 = vpack.c.bf16 %v390_v54, %v388_v53 }
 0x1dc   :  { %590 = vmatprep.mubr.bf16.mxu1 %v398_v56  ;;  %924 = vmatpush1.bf16.msra.mxu1 %v1527_v3  ;;  %v1551_v3 = vld [vmem:[#allocation17 + $0x8] sm:$0xff]  }
 0x1dd   :  { %591 = vmatmul.mubr.bf16.gmra.mrb[12].mxu1 %v397_v55  ;;  %925 = vmatprep.subr.bf16.mxu1 %v1532_v4  ;;  %v1552_v4 = vld [vmem:[#allocation17 + $0x50] sm:$0xff]  }
 0x1de   :  { %953 = vmatprep.mubr.bf16.mxu1 %v1881_v0 }
 0x1e0   :  { %926 = vmatpush1.bf16.msra.mxu1 %v1530_v5  ;;  %v1553_v5 = vld [vmem:[#allocation17 + $0x10] sm:$0xff]  }
 0x1e1   :  { %927 = vmatprep.subr.bf16.mxu1 %v1535_v6  ;;  %v1554_v6 = vld [vmem:[#allocation17 + $0x58] sm:$0xff]  }
 0x1e4   :  { %928 = vmatpush1.bf16.msra.mxu1 %v1533_v7  ;;  %v1555_v7 = vld [vmem:[#allocation17 + $0x18] sm:$0xff]  }
 0x1e5   :  { %929 = vmatprep.subr.bf16.mxu1 %v1538_v8  ;;  %v1556_v8 = vld [vmem:[#allocation17 + $0x60] sm:$0xff]  }
 0x1e8   :  { %930 = vmatpush1.bf16.msra.mxu1 %v1536_v9  ;;  %v2135_v9 = vld [vmem:[#allocation17 + $0x20] sm:$0xff]  }
 0x1e9   :  { %931 = vmatprep.subr.bf16.mxu1 %v1541_v10  ;;  %v2137_v10 = vld [vmem:[#allocation17 + $0x68] sm:$0xff]  }
 0x1ec   :  { %932 = vmatpush1.bf16.msra.mxu1 %v1539_v11  ;;  %v627_v11 = vld [vmem:[#allocation13] sm:$0x3] }
 0x1ed   :  { %933 = vmatprep.subr.bf16.mxu1 %v1544_v57 }
 0x1f0   :  { %934 = vmatpush1.bf16.msra.mxu1 %v1542_v58  ;;  %v1559_v58 = vld [vmem:[#allocation17 + $0x28] sm:$0xff]  }
 0x1f1   :  { %935 = vmatprep.subr.bf16.mxu1 %v1547_v60  ;;  %v1560_v60 = vld [vmem:[#allocation17 + $0x70] sm:$0xff]  }
 0x1f4   :  { %936 = vmatpush1.bf16.msra.mxu1 %v1545_v1  ;;  %v1561_v1 = vld [vmem:[#allocation17 + $0x30] sm:$0xff]  }
 0x1f5   :  { %1426 = vmatprep.subr.bf16.mxu1 %v1548_v62  ;;  %v1563_v62 = vld [vmem:[#allocation17 + $0x38] sm:$0xff]  }
 0x298   :  { %v1362_v12 = vpop.f32.mrb[0].mxu1 }
 0x299   :  { %v1363_v14 = vpop.f32.mrb[1].mxu1 }
 0x29a   :  { %v1364_v15 = vadd.f32 %v1363_v14, %v1362_v12  ;;  %v1365_v16 = vpop.f32.mrb[2].mxu1  ;;  %v632_v12 = vrot.slane %v627_v11, %v2125_v59 }
 0x29b   :  { %v1366_v17 = vpop.f32.mrb[3].mxu1 }
 0x29c   :  { %v569_v18 = vadd.f32 %v1364_v15, %v1280_v13  ;;  %v1367_v19 = vadd.f32 %v1366_v17, %v1365_v16 }
 0x29e   :  { %v572_v20 = vadd.f32 %v1367_v19, %v1280_v13  ;;  %v599_v21 = vmax.f32 %v569_v18, 0.0 }
 0x2a0   :  { %v600_v22 = vmax.f32 %v572_v20, 0.0  ;;  %v1368_v23 = vpop.f32.mrb[4].mxu1 }
 0x2a1   :  { %v1369_v24 = vpop.f32.mrb[5].mxu1 }
 0x2a2   :  { %v607_v25 = vpack.c.bf16 %v600_v22, %v599_v21  ;;  %v1370_v26 = vadd.f32 %v1369_v24, %v1368_v23  ;;  %v1371_v27 = vpop.f32.mrb[6].mxu1 }
 0x2a3   :  { %v1372_v28 = vpop.f32.mrb[7].mxu1 }
 0x2a4   :  { %v577_v29 = vadd.f32 %v1370_v26, %v1280_v13  ;;  %v1373_v30 = vadd.f32 %v1372_v28, %v1371_v27  ;;  %752 = vmatmul.mubr.bf16.vlgmr.msra.gmra.mrb[16].mxu0 %v607_v25 }
 0x2a5   :  { %761 = vmatprep.mubr.bf16.mxu0 %v1881_v0  ;;  %1387 = vmatpush3.bf16.msra.mxu0 %v1549_v63 }
 0x2a6   :  { %v580_v31 = vadd.f32 %v1373_v30, %v1280_v13  ;;  %v601_v32 = vmax.f32 %v577_v29, 0.0  ;;  %1388 = vmatprep.subr.bf16.mxu0 %v1550_v2 }
 0x2a8   :  { %v602_v33 = vmax.f32 %v580_v31, 0.0  ;;  %v1374_v34 = vpop.f32.mrb[8].mxu1 }
 0x2a9   :  { %v1375_v35 = vpop.f32.mrb[9].mxu1  ;;  %1389 = vmatpush3.bf16.msra.mxu0 %v1551_v3 }
 0x2aa   :  { %v1376_v36 = vadd.f32 %v1375_v35, %v1374_v34  ;;  %v1377_v37 = vpop.f32.mrb[10].mxu1  ;;  %v608_v38 = vpack.c.bf16 %v602_v33, %v601_v32  ;;  %1390 = vmatprep.subr.bf16.mxu0 %v1552_v4 }
 0x2ab   :  { %v1378_v39 = vpop.f32.mrb[11].mxu1 }
 0x2ac   :  { %v585_v40 = vadd.f32 %v1376_v36, %v1280_v13  ;;  %v1379_v41 = vadd.f32 %v1378_v39, %v1377_v37  ;;  %762 = vmatmul.mubr.bf16.gmra.mrb[20].mxu0 %v608_v38 }
 0x2ad   :  { %771 = vmatprep.mubr.bf16.mxu0 %v1881_v0  ;;  %1391 = vmatpush3.bf16.msra.mxu0 %v1553_v5 }
 0x2ae   :  { %v588_v42 = vadd.f32 %v1379_v41, %v1280_v13  ;;  %v603_v43 = vmax.f32 %v585_v40, 0.0  ;;  %1392 = vmatprep.subr.bf16.mxu0 %v1554_v6 }
 0x2b0   :  { %v604_v44 = vmax.f32 %v588_v42, 0.0  ;;  %v1380_v45 = vpop.f32.mrb[12].mxu1 }
 0x2b1   :  { %v1381_v46 = vpop.f32.mrb[13].mxu1  ;;  %1393 = vmatpush3.bf16.msra.mxu0 %v1555_v7 }
 0x2b2   :  { %v1382_v47 = vadd.f32 %v1381_v46, %v1380_v45  ;;  %v1383_v48 = vpop.f32.mrb[14].mxu1  ;;  %v609_v49 = vpack.c.bf16 %v604_v44, %v603_v43  ;;  %1394 = vmatprep.subr.bf16.mxu0 %v1556_v8 }
 0x2b3   :  { %v1384_v50 = vpop.f32.mrb[15].mxu1 }
 0x2b4   :  { %v593_v51 = vadd.f32 %v1382_v47, %v1280_v13  ;;  %v1385_v52 = vadd.f32 %v1384_v50, %v1383_v48  ;;  %772 = vmatmul.mubr.bf16.gmra.mrb[24].mxu0 %v609_v49 }
 0x2b5   :  { %781 = vmatprep.mubr.bf16.mxu0 %v1881_v0  ;;  %1395 = vmatpush3.bf16.msra.mxu0 %v2135_v9 }
 0x2b6   :  { %v596_v53 = vadd.f32 %v1385_v52, %v1280_v13  ;;  %v605_v54 = vmax.f32 %v593_v51, 0.0  ;;  %1396 = vmatprep.subr.bf16.mxu0 %v2137_v10  ;;  %v2143_v13 = vrot.slane %v627_v11, %v2127_v61 }
 0x2b8   :  { %v606_v55 = vmax.f32 %v596_v53, 0.0 }
 0x2b9   :  { %1397 = vmatpush3.bf16.msra.mxu0 %v1559_v58 }
 0x2ba   :  { %v610_v56 = vpack.c.bf16 %v606_v55, %v605_v54  ;;  %1398 = vmatprep.subr.bf16.mxu0 %v1560_v60 }
 0x2bc   :  { %782 = vmatmul.mubr.bf16.gmra.mrb[28].mxu0 %v610_v56 }
 0x2bd   :  { %1399 = vmatpush3.bf16.msra.mxu0 %v1561_v1 }
 0x377   :  { %v753_v14 = vpop.f32.mrb[16].mxu0 }
 0x378   :  { %v754_v15 = vadd.f32 %v753_v14, %v632_v12  ;;  %v755_v16 = vpop.f32.mrb[17].mxu0 }
 0x379   :  { %v756_v17 = vadd.f32 %v755_v16, %v2143_v13  ;;  %v757_v18 = vpop.f32.mrb[18].mxu0 }
 0x37a   :  { %793 = vst.msk [vmem:[#allocation20] sm:$0xff] %vm792_vm0, %v754_v15  ;;  %v758_v19 = vadd.f32 %v757_v18, %v632_v12  ;;  %v759_v20 = vpop.f32.mrb[19].mxu0 }
 0x37b   :  { %v760_v21 = vadd.f32 %v759_v20, %v2143_v13  ;;  %v801_v22 = vmax.f32 %v756_v17, 0.0 }
 0x37c   :  { %794 = vst.msk [vmem:[#allocation20 + $0x8] sm:$0xff] %vm792_vm0, %v758_v19 }
 0x37d   :  { %v802_v23 = vmax.f32 %v760_v21, 0.0 }
 0x37f   :  { %v809_v24 = vpack.c.bf16 %v802_v23, %v801_v22  ;;  %v763_v25 = vpop.f32.mrb[20].mxu0 }
 0x380   :  { %v764_v26 = vadd.f32 %v763_v25, %v632_v12  ;;  %v765_v27 = vpop.f32.mrb[21].mxu0 }
 0x381   :  { %v766_v28 = vadd.f32 %v765_v27, %v2143_v13  ;;  %v767_v29 = vpop.f32.mrb[22].mxu0  ;;  %954 = vmatmul.mubr.bf16.vlgmr.msra.gmra.mrb[16].mxu1 %v809_v24 }
 0x382   :  { %795 = vst.msk [vmem:[#allocation20 + $0x10] sm:$0xff] %vm792_vm0, %v764_v26  ;;  %v768_v30 = vadd.f32 %v767_v29, %v632_v12  ;;  %v769_v31 = vpop.f32.mrb[23].mxu0  ;;  %963 = vmatprep.mubr.bf16.mxu1 %v1881_v0  ;;  %1434 = vmatpush3.bf16.msra.mxu1 %v1549_v63  ;;  %v829_v63 = vld [vmem:[#allocation16] sm:$0x3] }
 0x383   :  { %v770_v32 = vadd.f32 %v769_v31, %v2143_v13  ;;  %1427 = vmatprep.subr.bf16.mxu1 %v1550_v2  ;;  %v803_v33 = vmax.f32 %v766_v28, 0.0  ;;  %v834_v2 = vrot.slane %v829_v63, %v2125_v59 }
 0x384   :  { %796 = vst.msk [vmem:[#allocation20 + $0x18] sm:$0xff] %vm792_vm0, %v768_v30 }
 0x385   :  { %v804_v34 = vmax.f32 %v770_v32, 0.0 }
 0x386   :  { %1435 = vmatpush3.bf16.msra.mxu1 %v1551_v3  ;;  %v838_v3 = vrot.slane %v829_v63, %v2127_v61 }
 0x387   :  { %v810_v35 = vpack.c.bf16 %v804_v34, %v803_v33  ;;  %v773_v36 = vpop.f32.mrb[24].mxu0  ;;  %1428 = vmatprep.subr.bf16.mxu1 %v1552_v4 }
 0x388   :  { %v774_v37 = vadd.f32 %v773_v36, %v632_v12  ;;  %v775_v38 = vpop.f32.mrb[25].mxu0 }
 0x389   :  { %v776_v39 = vadd.f32 %v775_v38, %v2143_v13  ;;  %v777_v40 = vpop.f32.mrb[26].mxu0  ;;  %964 = vmatmul.mubr.bf16.gmra.mrb[20].mxu1 %v810_v35 }
 0x38a   :  { %797 = vst.msk [vmem:[#allocation20 + $0x20] sm:$0xff] %vm792_vm0, %v774_v37  ;;  %v778_v41 = vadd.f32 %v777_v40, %v632_v12  ;;  %v779_v42 = vpop.f32.mrb[27].mxu0  ;;  %973 = vmatprep.mubr.bf16.mxu1 %v1881_v0  ;;  %1436 = vmatpush3.bf16.msra.mxu1 %v1553_v5 }
 0x38b   :  { %v780_v43 = vadd.f32 %v779_v42, %v2143_v13  ;;  %1429 = vmatprep.subr.bf16.mxu1 %v1554_v6  ;;  %v805_v44 = vmax.f32 %v776_v39, 0.0 }
 0x38c   :  { %798 = vst.msk [vmem:[#allocation20 + $0x28] sm:$0xff] %vm792_vm0, %v778_v41 }
 0x38d   :  { %v806_v45 = vmax.f32 %v780_v43, 0.0 }
 0x38e   :  { %1437 = vmatpush3.bf16.msra.mxu1 %v1555_v7 }
 0x38f   :  { %v811_v46 = vpack.c.bf16 %v806_v45, %v805_v44  ;;  %v783_v47 = vpop.f32.mrb[28].mxu0  ;;  %1430 = vmatprep.subr.bf16.mxu1 %v1556_v8 }
 0x390   :  { %v784_v48 = vadd.f32 %v783_v47, %v632_v12  ;;  %v785_v49 = vpop.f32.mrb[29].mxu0 }
 0x391   :  { %v786_v50 = vadd.f32 %v785_v49, %v2143_v13  ;;  %v787_v51 = vpop.f32.mrb[30].mxu0  ;;  %974 = vmatmul.mubr.bf16.gmra.mrb[24].mxu1 %v811_v46 }
 0x392   :  { %799 = vst.msk [vmem:[#allocation20 + $0x30] sm:$0xff] %vm792_vm0, %v784_v48  ;;  %v788_v52 = vadd.f32 %v787_v51, %v632_v12  ;;  %v789_v53 = vpop.f32.mrb[31].mxu0  ;;  %983 = vmatprep.mubr.bf16.mxu1 %v1881_v0  ;;  %1438 = vmatpush3.bf16.msra.mxu1 %v2135_v9  ;;  %v1562_v0 = vld [vmem:[#allocation17 + $0x78] sm:$0xff]  }
 0x393   :  { %v790_v54 = vadd.f32 %v789_v53, %v2143_v13  ;;  %1431 = vmatprep.subr.bf16.mxu1 %v2137_v10  ;;  %v807_v55 = vmax.f32 %v786_v50, 0.0  ;;  %1400 = vmatprep.subr.bf16.mxu0 %v1562_v0 }
 0x394   :  { %800 = vst.msk [vmem:[#allocation20 + $0x38] sm:$0xff] %vm792_vm0, %v788_v52  ;;  %1401 = vmatpush3.bf16.msra.mxu0 %v1563_v62 }
 0x395   :  { %v808_v56 = vmax.f32 %v790_v54, 0.0 }
 0x396   :  { %1439 = vmatpush3.bf16.msra.mxu1 %v1559_v58 }
 0x397   :  { %v812_v57 = vpack.c.bf16 %v808_v56, %v807_v55  ;;  %1432 = vmatprep.subr.bf16.mxu1 %v1560_v60 }
 0x399   :  { %984 = vmatmul.mubr.bf16.gmra.mrb[28].mxu1 %v812_v57 }
 0x39a   :  { %1440 = vmatpush3.bf16.msra.mxu1 %v1561_v1 }
 0x39b   :  { %1433 = vmatprep.subr.bf16.mxu1 %v1562_v0 }
 0x39e   :  { %1441 = vmatpush3.bf16.msra.mxu1 %v1563_v62 }
 0x454   :  { %v955_v4 = vpop.f32.mrb[16].mxu1 }
 0x455   :  { %v956_v5 = vadd.f32 %v955_v4, %v834_v2  ;;  %v957_v6 = vpop.f32.mrb[17].mxu1 }
 0x456   :  { %v958_v7 = vadd.f32 %v957_v6, %v838_v3  ;;  %v959_v8 = vpop.f32.mrb[18].mxu1 }
 0x457   :  { %v960_v9 = vadd.f32 %v959_v8, %v834_v2  ;;  %v961_v10 = vpop.f32.mrb[19].mxu1  ;;  %v994_v12 = vmax.f32 %v956_v5, 0.0 }
 0x458   :  { %v962_v11 = vadd.f32 %v961_v10, %v838_v3  ;;  %v995_v14 = vmax.f32 %v958_v7, 0.0 }
 0x459   :  { %v996_v13 = vmax.f32 %v960_v9, 0.0 }
 0x45a   :  { %v997_v15 = vmax.f32 %v962_v11, 0.0 }
 0x45b   :  { %v1010_v16 = vpack.c.bf16 %v996_v13, %v994_v12 }
 0x45c   :  { %v1011_v17 = vpack.c.bf16 %v997_v15, %v995_v14  ;;  %v965_v18 = vpop.f32.mrb[20].mxu1 }
 0x45d   :  { %v966_v19 = vadd.f32 %v965_v18, %v834_v2  ;;  %v967_v20 = vpop.f32.mrb[21].mxu1 }
 0x45e   :  { %v968_v59 = vadd.f32 %v967_v20, %v838_v3  ;;  %v969_v21 = vpop.f32.mrb[22].mxu1  ;;  %1185 = vmatprep.mubr.bf16.mxu0 %v1011_v17 }
 0x45f   :  { %v970_v61 = vadd.f32 %v969_v21, %v834_v2  ;;  %v971_v22 = vpop.f32.mrb[23].mxu1  ;;  %1186 = vmatmul.mubr.bf16.vlgmr.msra.gmra.mrb[32].mxu0 %v1010_v16  ;;  %v998_v24 = vmax.f32 %v966_v19, 0.0 }
 0x460   :  { %v972_v23 = vadd.f32 %v971_v22, %v838_v3  ;;  %v999_v26 = vmax.f32 %v968_v59, 0.0 }
 0x461   :  { %v1000_v25 = vmax.f32 %v970_v61, 0.0 }
 0x462   :  { %v1001_v27 = vmax.f32 %v972_v23, 0.0 }
 0x463   :  { %v1012_v28 = vpack.c.bf16 %v1000_v25, %v998_v24 }
 0x464   :  { %v1013_v29 = vpack.c.bf16 %v1001_v27, %v999_v26  ;;  %v975_v30 = vpop.f32.mrb[24].mxu1 }
 0x465   :  { %v976_v31 = vadd.f32 %v975_v30, %v834_v2  ;;  %v977_v32 = vpop.f32.mrb[25].mxu1 }
 0x466   :  { %v978_v33 = vadd.f32 %v977_v32, %v838_v3  ;;  %v979_v34 = vpop.f32.mrb[26].mxu1  ;;  %1193 = vmatprep.mubr.bf16.mxu0 %v1013_v29 }
 0x467   :  { %v980_v35 = vadd.f32 %v979_v34, %v834_v2  ;;  %v981_v36 = vpop.f32.mrb[27].mxu1  ;;  %1194 = vmatmul.mubr.bf16.gmra.mrb[36].mxu0 %v1012_v28  ;;  %v1002_v38 = vmax.f32 %v976_v31, 0.0 }
 0x468   :  { %v982_v37 = vadd.f32 %v981_v36, %v838_v3  ;;  %v1003_v40 = vmax.f32 %v978_v33, 0.0 }
 0x469   :  { %v1004_v39 = vmax.f32 %v980_v35, 0.0 }
 0x46a   :  { %v1005_v41 = vmax.f32 %v982_v37, 0.0 }
 0x46b   :  { %v1014_v42 = vpack.c.bf16 %v1004_v39, %v1002_v38 }
 0x46c   :  { %v1015_v43 = vpack.c.bf16 %v1005_v41, %v1003_v40  ;;  %v985_v44 = vpop.f32.mrb[28].mxu1 }
 0x46d   :  { %v986_v45 = vadd.f32 %v985_v44, %v834_v2  ;;  %v987_v46 = vpop.f32.mrb[29].mxu1 }
 0x46e   :  { %v988_v47 = vadd.f32 %v987_v46, %v838_v3  ;;  %v989_v48 = vpop.f32.mrb[30].mxu1  ;;  %1201 = vmatprep.mubr.bf16.mxu1 %v1015_v43 }
 0x46f   :  { %v990_v49 = vadd.f32 %v989_v48, %v834_v2  ;;  %v991_v50 = vpop.f32.mrb[31].mxu1  ;;  %1202 = vmatmul.mubr.bf16.vlgmr.msra.gmra.mrb[32].mxu1 %v1014_v42  ;;  %v1006_v52 = vmax.f32 %v986_v45, 0.0 }
 0x470   :  { %v992_v51 = vadd.f32 %v991_v50, %v838_v3  ;;  %v1007_v54 = vmax.f32 %v988_v47, 0.0 }
 0x471   :  { %v1008_v53 = vmax.f32 %v990_v49, 0.0 }
 0x472   :  { %v1009_v55 = vmax.f32 %v992_v51, 0.0 }
 0x473   :  { %v1016_v56 = vpack.c.bf16 %v1008_v53, %v1006_v52 }
 0x474   :  { %v1017_v57 = vpack.c.bf16 %v1009_v55, %v1007_v54 }
 0x476   :  { %1209 = vmatprep.mubr.bf16.mxu1 %v1017_v57 }
 0x477   :  { %1210 = vmatmul.mubr.bf16.gmra.mrb[36].mxu1 %v1016_v56 }
 0x478   :  { %1817 = shalt.err (!%p1814_p8)
}
 0x479   :  { %s1818_s25 = scalar_lea.hbm %s2209_s11, 1024 }
 0x47a   :  { %p1819_p9 = scmp.ne.s32.totalorder %s2209_s11, %s1818_s25  ;;  %p1822_p10 = scmp.lt.u32.totalorder %s1818_s25, %s2209_s11 }
 0x47c   :  { %p1824_p11 = pnand %p1822_p10, %p1819_p9 }
 0x47e   :  { %1827 = shalt.err (!%p1824_p11)
}
 0x47f   :  { %1237 = dma.vmem_to_hbm [thread:$0]  %s1232_s4, 1024, %s2209_s11, [#allocation4], %s1868_s15, %s1868_s15, %s1869_s16   ;;  %v1329_v60 = vld [vmem:[#allocation19] ss:$0 sm:$0xff] }
 0x480   :  { %s1883_s11 = smov [#allocation21]  }
 0x481   :  { %s1243_s6 = sshll.u32 %s1883_s11, 4  ;;  %s1244_s6 = int_to_ptr.vmem [resolvable:$true] %s1243_s6 }
 0x482   :  { %s1828_s2 = scalar_lea.vmem %s1244_s6, 1024  ;;  %p1833_p13 = scmp.lt.s32.totalorder %s1244_s6, %s1244_s6 }
 0x483   :  { %p1829_p12 = scmp.ne.s32.totalorder %s1244_s6, %s1828_s2  ;;  %p1834_p0 = scmp.lt.s32.totalorder %s1828_s2, %s1828_s2 }
 0x485   :  { %p1835_p1 = por %p1834_p0, %p1833_p13 }
 0x487   :  { %p1836_p2 = pnand %p1835_p1, %p1829_p12 }
 0x532   :  { %v1402_v58 = vpop.f32.mrb[32].mxu0 }
 0x533   :  { %v1403_v1 = vpop.f32.mrb[33].mxu0 }
 0x534   :  { %v1404_v0 = vadd.f32 %v1403_v1, %v1402_v58  ;;  %v1405_v62 = vpop.f32.mrb[34].mxu0 }
 0x535   :  { %v1406_v63 = vpop.f32.mrb[35].mxu0 }
 0x536   :  { %v1188_v2 = vadd.f32 %v1404_v0, %v1329_v60  ;;  %v1407_v3 = vadd.f32 %v1406_v63, %v1405_v62 }
 0x538   :  { %1218 = vst [vmem:[#allocation21] sm:$0xff] %v1188_v2  ;;  %v1191_v4 = vadd.f32 %v1407_v3, %v1329_v60 }
 0x53a   :  { %1219 = vst [vmem:[#allocation21 + $0x8] sm:$0xff] %v1191_v4  ;;  %v1408_v5 = vpop.f32.mrb[36].mxu0 }
 0x53b   :  { %v1409_v6 = vpop.f32.mrb[37].mxu0 }
 0x53c   :  { %v1410_v7 = vadd.f32 %v1409_v6, %v1408_v5  ;;  %v1411_v8 = vpop.f32.mrb[38].mxu0 }
 0x53d   :  { %v1412_v9 = vpop.f32.mrb[39].mxu0 }
 0x53e   :  { %v1196_v10 = vadd.f32 %v1410_v7, %v1329_v60  ;;  %v1413_v11 = vadd.f32 %v1412_v9, %v1411_v8 }
 0x540   :  { %1220 = vst [vmem:[#allocation21 + $0x10] sm:$0xff] %v1196_v10  ;;  %v1199_v12 = vadd.f32 %v1413_v11, %v1329_v60 }
 0x542   :  { %1221 = vst [vmem:[#allocation21 + $0x18] sm:$0xff] %v1199_v12  ;;  %v1414_v13 = vpop.f32.mrb[32].mxu1 }
 0x543   :  { %v1415_v14 = vpop.f32.mrb[33].mxu1 }
 0x544   :  { %v1416_v15 = vadd.f32 %v1415_v14, %v1414_v13  ;;  %v1417_v16 = vpop.f32.mrb[34].mxu1 }
 0x545   :  { %v1418_v17 = vpop.f32.mrb[35].mxu1 }
 0x546   :  { %v1204_v18 = vadd.f32 %v1416_v15, %v1329_v60  ;;  %v1419_v19 = vadd.f32 %v1418_v17, %v1417_v16 }
 0x548   :  { %1222 = vst [vmem:[#allocation21 + $0x20] sm:$0xff] %v1204_v18  ;;  %v1207_v20 = vadd.f32 %v1419_v19, %v1329_v60 }
 0x54a   :  { %1223 = vst [vmem:[#allocation21 + $0x28] sm:$0xff] %v1207_v20  ;;  %v1420_v59 = vpop.f32.mrb[36].mxu1 }
 0x54b   :  { %v1421_v21 = vpop.f32.mrb[37].mxu1 }
 0x54c   :  { %v1422_v61 = vadd.f32 %v1421_v21, %v1420_v59  ;;  %v1423_v22 = vpop.f32.mrb[38].mxu1 }
 0x54d   :  { %v1424_v23 = vpop.f32.mrb[39].mxu1 }
 0x54e   :  { %v1212_v24 = vadd.f32 %v1422_v61, %v1329_v60  ;;  %v1425_v25 = vadd.f32 %v1424_v23, %v1423_v22 }
 0x550   :  { %1224 = vst [vmem:[#allocation21 + $0x30] sm:$0xff] %v1212_v24  ;;  %v1215_v26 = vadd.f32 %v1425_v25, %v1329_v60 }
 0x552   :  { %1225 = vst [vmem:[#allocation21 + $0x38] sm:$0xff] %v1215_v26 }
 0x553   :  { %1839 = shalt.err (!%p1836_p2)
}
 0x554   :  { %s1840_s13 = scalar_lea.hbm %s2210_s12, 1024 }
 0x555   :  { %p1841_p3 = scmp.ne.s32.totalorder %s2210_s12, %s1840_s13  ;;  %p1844_p4 = scmp.lt.u32.totalorder %s1840_s13, %s2210_s12 }
 0x557   :  { %p1846_p5 = pnand %p1844_p4, %p1841_p3 }
 0x559   :  { %1849 = shalt.err (!%p1846_p5)
}
 0x55a   :  { %1249 = dma.vmem_to_hbm [thread:$0]  %s1244_s6, 1024, %s2210_s12, [#allocation22], %s1868_s15, %s1868_s15, %s1869_s16  }
 0x55b   :  { %1862 = dma.done.wait [#allocation4], 1024  }
 0x55c   :  { %1863 = vsyncadd [#allocation4], 4294966272 }
 0x55d   :  { %1864 = dma.done.wait [#allocation22], 1024  }
 0x55e   :  { %1865 = vsyncadd [#allocation22], 4294966272 }
 0x55f   :  { %1256 = vsyncpa [#allocation3], 1 }
 0x560   :  { %1257 = vsyncpa [#allocation6], 1 }
 0x561   :  { %1258 = vsyncpa [#allocation9], 1 }
 0x562   :  { %1259 = vsyncpa [#allocation12], 1 }
 0x563   :  { %1260 = vsyncpa [#allocation15], 1 }
 0x564   :  { %1261 = vsyncpa [#allocation18], 1 }
 0x565   :  { %1262 = vsyncpa [#allocation4], 1 }
 0x566   :  { %1263 = vsyncpa [#allocation22], 1 }

</bundles_post_ra>
